<compile_context>
chip_gen: v7x
topology: tpu7x:2x2x1
jax: 0.10.0
libtpu: 0.0.40
codegen_flags: <defaults>
</compile_context>

<pallas_src>
import jax
import jax.numpy as jnp
from jax.experimental import pallas as pl
from jax.experimental.pallas import tpu as pltpu

_LANE = 128
_SUBLANE = 8
_ROW_ALIGN = 32  # block sublane multiple valid for f32 (8), bf16 (16), int8/fp8 (32)


def _round_up(x: int, m: int) -> int:
    return -(-x // m) * m


def _make_kernel(smoothing: float, total: int, tile_rows: int):
    one_minus_s = float(1.0 - smoothing)
    half_s = float(0.5 * smoothing)
    tile_elems = tile_rows * _LANE

    def kernel(x_ref, t_ref, out_ref, acc_ref):
        p = pl.program_id(0)          # parallel slice (megacore axis)
        k = pl.program_id(1)          # reduction axis within the slice

        @pl.when(k == 0)
        def _():
            acc_ref[...] = jnp.zeros_like(acc_ref)

        x = x_ref[...].astype(jnp.float32)     # (tile_rows, 128)
        t = t_ref[...].astype(jnp.float32)
        # label smoothing (no-grad in torch; identical forward value)
        t = t * one_minus_s + half_s
        # stable BCE-with-logits: max(x,0) - x*t + log(1 + exp(-|x|))
        loss = jnp.maximum(x, 0.0) - x * t + jnp.log1p(jnp.exp(-jnp.abs(x)))

        # Logical flat offset of this tile (int32: fine below 2^31 elements).
        base = (p * pl.num_programs(1) + k) * tile_elems

        # Fast path: tile fully in-bounds -> no iota / compare / select work.
        @pl.when(base + tile_elems <= total)
        def _():
            acc_ref[...] += jnp.sum(
                loss.reshape(tile_rows // _SUBLANE, _SUBLANE, _LANE), axis=0
            )

        # Tail path: only the boundary tile (and any fully-clamped tiles) pays
        # for masking.  Out-of-bounds rows read garbage, but jnp.where selects
        # 0.0 for them (NaN/Inf in the unselected branch is harmless).
        @pl.when(base + tile_elems > total)
        def _():
            row = jax.lax.broadcasted_iota(jnp.int32, (tile_rows, _LANE), 0)
            col = jax.lax.broadcasted_iota(jnp.int32, (tile_rows, _LANE), 1)
            in_tile_idx = row * _LANE + col
            masked = jnp.where(in_tile_idx < (total - base), loss, 0.0)
            acc_ref[...] += jnp.sum(
                masked.reshape(tile_rows // _SUBLANE, _SUBLANE, _LANE), axis=0
            )

        @pl.when(k == pl.num_programs(1) - 1)
        def _():
            out_ref[0] = acc_ref[...]

    return kernel


def _default_geometry():
    """Per-generation (num_parallel, max_tile_rows)."""
    try:
        kind = jax.devices()[0].device_kind.lower()
    except Exception:
        return 1, 2048
    if "v7" in kind:
        # 2 TensorCores; 8192-row f32 tiles -> 16 MiB of double-buffered input,
        # safe inside v7x's 64 MiB physical VMEM.
        return 2, 8192
    if "v6" in kind:
        return 1, 8192
    if "v5" in kind:
        # stay near v5e's 16 MiB scoped-VMEM default
        return 1, 4096
    return 1, 2048


def bce_with_logits_loss_with_smoothing(
    logits,
    targets,
    smoothing: float = 0.05,
    *,
    num_parallel: int | None = None,
    max_tile_rows: int | None = None,
):
    """Scalar f32 loss matching nn.BCEWithLogitsLoss() (mean reduction) applied
    to label-smoothed targets."""
    assert logits.shape == targets.shape
    total = int(logits.size)
    assert total > 0

    auto_p, auto_rows = _default_geometry()
    if num_parallel is None:
        num_parallel = auto_p
    if max_tile_rows is None:
        max_tile_rows = auto_rows

    x = logits.reshape(-1)
    t = targets.reshape(-1)

    # Only pad when the flat size is lane-ragged (pad <= 127 elements).  When
    # total % 128 == 0 the reshapes below are free (no data movement) and the
    # kernel runs directly on the caller's buffers.
    lane_pad = (-total) % _LANE
    if lane_pad:
        x = jnp.pad(x, (0, lane_pad))
        t = jnp.pad(t, (0, lane_pad))
    n_rows = (total + lane_pad) // _LANE
    x2 = x.reshape(n_rows, _LANE)
    t2 = t.reshape(n_rows, _LANE)

    # Tiling geometry (all static Python ints).
    rows_per_slice = -(-n_rows // num_parallel)
    tile_rows = min(int(max_tile_rows), _round_up(rows_per_slice, _ROW_ALIGN))
    tile_rows = max(tile_rows, _ROW_ALIGN)
    tiles_per_slice = -(-rows_per_slice // tile_rows)
    # Clamp target for tiles whose logical window starts past the array: they
    # re-read the last in-bounds block and are fully masked in-kernel.
    last_block = -(-n_rows // tile_rows) - 1

    def in_index_map(p, k):
        kg = p * tiles_per_slice + k
        return (jnp.minimum(kg, last_block), 0)

    kernel = _make_kernel(float(smoothing), total, tile_rows)

    # Explicit VMEM budget sized from the tile geometry (2 inputs x 2 pipeline
    # buffers), plus headroom; capped at 48 MiB for v7x's 64 MiB VMEM.
    in_buf_bytes = 2 * tile_rows * _LANE * (
        jnp.dtype(logits.dtype).itemsize + jnp.dtype(targets.dtype).itemsize
    )
    vmem_limit = int(min(in_buf_bytes + (8 << 20), 48 << 20))

    partials = pl.pallas_call(
        kernel,
        out_shape=jax.ShapeDtypeStruct((num_parallel, _SUBLANE, _LANE), jnp.float32),
        grid_spec=pltpu.PrefetchScalarGridSpec(
            num_scalar_prefetch=0,
            grid=(num_parallel, tiles_per_slice),
            in_specs=[
                pl.BlockSpec((tile_rows, _LANE), in_index_map),
                pl.BlockSpec((tile_rows, _LANE), in_index_map),
            ],
            out_specs=pl.BlockSpec((1, _SUBLANE, _LANE), lambda p, k: (p, 0, 0)),
            scratch_shapes=[pltpu.VMEM((_SUBLANE, _LANE), jnp.float32)],
        ),
        compiler_params=pltpu.CompilerParams(
            dimension_semantics=("parallel", "arbitrary"),
            vmem_limit_bytes=vmem_limit,
        ),
    )(x2, t2)

    # Tiny final reduce of num_parallel * 8 * 128 partial sums + mean divide.
    return jnp.sum(partials) / jnp.float32(total)


def _reference(logits, targets, smoothing):
    t = targets * (1.0 - smoothing) + 0.5 * smoothing
    return jnp.mean(
        jnp.maximum(logits, 0.0)
        - logits * t
        + jnp.log1p(jnp.exp(-jnp.abs(logits)))
    )


if __name__ == "__main__":
    key = jax.random.PRNGKey(0)
    k1, k2 = jax.random.split(key)
    s = 0.05

    # Case 1: small NCHW binary-segmentation style shape (2048 elements,
    # multiple of 128 -> zero-copy path, boundary tile exercises the mask branch).
    B, C, H, W = 2, 4, 16, 16
    logits = jax.random.normal(k1, (B, C, H, W), dtype=jnp.float32) * 2.0
    targets = (jax.random.uniform(k2, (B, C, H, W)) > 0.5).astype(jnp.float32)
    loss = jax.block_until_ready(
        bce_with_logits_loss_with_smoothing(logits, targets, smoothing=s)
    )
    ref = _reference(logits, targets, s)
    assert jnp.allclose(loss, ref, rtol=1e-5, atol=1e-6), (loss, ref)

    # Case 2: larger lane-aligned shape (32768 elements) -> fast path only.
    B3, C3, H3, W3 = 2, 4, 64, 64
    lg3 = jax.random.normal(k2, (B3, C3, H3, W3), dtype=jnp.float32)
    tg3 = (jax.random.uniform(k1, (B3, C3, H3, W3)) > 0.5).astype(jnp.float32)
    loss3 = jax.block_until_ready(
        bce_with_logits_loss_with_smoothing(lg3, tg3, smoothing=s)
    )
    ref3 = _reference(lg3, tg3, s)
    assert jnp.allclose(loss3, ref3, rtol=1e-5, atol=1e-6), (loss3, ref3)

    # Case 3: lane-ragged shape (231 elements, not a multiple of 128) ->
    # minimal-pad + masking path.
    B2, C2, H2, W2 = 1, 3, 7, 11
    lg2 = jax.random.normal(k1, (B2, C2, H2, W2), dtype=jnp.float32)
    tg2 = (jax.random.uniform(k2, (B2, C2, H2, W2)) > 0.5).astype(jnp.float32)
    loss2 = jax.block_until_ready(
        bce_with_logits_loss_with_smoothing(lg2, tg2, smoothing=s)
    )
    ref2 = _reference(lg2, tg2, s)
    assert jnp.allclose(loss2, ref2, rtol=1e-5, atol=1e-6), (loss2, ref2)

    print("KERNEL_OK")
</pallas_src>

<mosaic_0001>
module attributes {stable_mosaic.version = 11 : i64} {
  func.func @kernel(%arg0: i32, %arg1: i32, %arg2: memref<32x128xf32, #tpu.memory_space<vmem>>, %arg3: memref<32x128xf32, #tpu.memory_space<vmem>>, %arg4: memref<1x8x128xf32, #tpu.memory_space<vmem>>, %arg5: memref<8x128xf32, #tpu.memory_space<vmem>>) attributes {dimension_semantics = [#tpu.dimension_semantics<parallel>, #tpu.dimension_semantics<arbitrary>], iteration_bounds = array<i64: 1, 1>, scalar_prefetch = 0 : i64, scratch_operands = 1 : i64, tpu.core_type = #tpu.core_type<tc>, window_params = [{transform_indices = @transform_0, window_bounds = array<i64: 32, 128>}, {transform_indices = @transform_1, window_bounds = array<i64: 32, 128>}, {transform_indices = @transform_2, window_bounds = array<i64: 1, 8, 128>}]} {
    %c0_i32 = arith.constant 0 : i32
    %0 = arith.cmpi eq, %arg1, %c0_i32 : i32
    %1 = arith.extui %0 : i1 to i32
    %c0_i32_0 = arith.constant 0 : i32
    %2 = arith.cmpi ne, %1, %c0_i32_0 : i32
    scf.if %2 {
      %cst_14 = arith.constant 0.000000e+00 : f32
      %33 = vector.broadcast %cst_14 : f32 to vector<8x128xf32>
      %c0_15 = arith.constant 0 : index
      %c0_16 = arith.constant 0 : index
      %34 = vector.load %arg5[%c0_15, %c0_16] : memref<8x128xf32, #tpu.memory_space<vmem>>, vector<8x128xf32>
      tpu.vector_store %arg5[%c0_15, %c0_16], %33 {strides = array<i32>} : memref<8x128xf32, #tpu.memory_space<vmem>>, vector<8x128xf32>,
    } else {
    }
    %c0 = arith.constant 0 : index
    %c0_1 = arith.constant 0 : index
    %3 = vector.load %arg2[%c0, %c0_1] : memref<32x128xf32, #tpu.memory_space<vmem>>, vector<32x128xf32>
    %c0_2 = arith.constant 0 : index
    %c0_3 = arith.constant 0 : index
    %4 = vector.load %arg3[%c0_2, %c0_3] : memref<32x128xf32, #tpu.memory_space<vmem>>, vector<32x128xf32>
    %cst = arith.constant 0.949999988 : f32
    %5 = vector.broadcast %cst : f32 to vector<32x128xf32>
    %6 = arith.mulf %4, %5 : vector<32x128xf32>
    %cst_4 = arith.constant 2.500000e-02 : f32
    %7 = vector.broadcast %cst_4 : f32 to vector<32x128xf32>
    %8 = arith.addf %6, %7 : vector<32x128xf32>
    %cst_5 = arith.constant 0.000000e+00 : f32
    %9 = vector.broadcast %cst_5 : f32 to vector<32x128xf32>
    %10 = arith.maximumf %3, %9 : vector<32x128xf32>
    %11 = arith.mulf %3, %8 : vector<32x128xf32>
    %12 = arith.subf %10, %11 : vector<32x128xf32>
    %13 = math.absf %3 : vector<32x128xf32>
    %cst_6 = arith.constant 0.000000e+00 : f32
    %14 = vector.broadcast %cst_6 : f32 to vector<32x128xf32>
    %15 = arith.subf %14, %13 : vector<32x128xf32>
    %16 = math.exp %15 : vector<32x128xf32>
    %17 = math.log1p %16 : vector<32x128xf32>
    %18 = arith.addf %12, %17 : vector<32x128xf32>
    %c1_i32 = arith.constant 1 : i32
    %19 = arith.muli %arg0, %c1_i32 : i32
    %20 = arith.addi %19, %arg1 : i32
    %c4096_i32 = arith.constant 4096 : i32
    %21 = arith.muli %20, %c4096_i32 : i32
    %c4096_i32_7 = arith.constant 4096 : i32
    %22 = arith.addi %21, %c4096_i32_7 : i32
    %c2048_i32 = arith.constant 2048 : i32
    %23 = arith.cmpi sle, %22, %c2048_i32 : i32
    %24 = arith.extui %23 : i1 to i32
    %c0_i32_8 = arith.constant 0 : i32
    %25 = arith.cmpi ne, %24, %c0_i32_8 : i32
    scf.if %25 {
      %c0_14 = arith.constant 0 : index
      %c0_15 = arith.constant 0 : index
      %33 = vector.load %arg5[%c0_14, %c0_15] : memref<8x128xf32, #tpu.memory_space<vmem>>, vector<8x128xf32>
      %34 = vector.shape_cast %18 : vector<32x128xf32> to vector<4x8x128xf32>
      %cst_16 = arith.constant dense<0.000000e+00> : vector<8x128xf32>
      %35 = vector.multi_reduction <add>, %34, %cst_16 [0] : vector<4x8x128xf32> to vector<8x128xf32>
      %36 = arith.addf %33, %35 : vector<8x128xf32>
      %c0_17 = arith.constant 0 : index
      %c0_18 = arith.constant 0 : index
      %37 = vector.load %arg5[%c0_17, %c0_18] : memref<8x128xf32, #tpu.memory_space<vmem>>, vector<8x128xf32>
      tpu.vector_store %arg5[%c0_17, %c0_18], %36 {strides = array<i32>} : memref<8x128xf32, #tpu.memory_space<vmem>>, vector<8x128xf32>,
    } else {
    }
    %c4096_i32_9 = arith.constant 4096 : i32
    %26 = arith.addi %21, %c4096_i32_9 : i32
    %c2048_i32_10 = arith.constant 2048 : i32
    %27 = arith.cmpi sgt, %26, %c2048_i32_10 : i32
    %28 = arith.extui %27 : i1 to i32
    %c0_i32_11 = arith.constant 0 : i32
    %29 = arith.cmpi ne, %28, %c0_i32_11 : i32
    scf.if %29 {
      %33 = tpu.iota {dimensions = array<i32: 0>} : vector<32x128xi32>
      %34 = tpu.iota {dimensions = array<i32: 1>} : vector<32x128xi32>
      %c128_i32 = arith.constant 128 : i32
      %35 = vector.broadcast %c128_i32 : i32 to vector<32x128xi32>
      %36 = arith.muli %33, %35 : vector<32x128xi32>
      %37 = arith.addi %36, %34 : vector<32x128xi32>
      %c2048_i32_14 = arith.constant 2048 : i32
      %38 = arith.subi %c2048_i32_14, %21 : i32
      %39 = vector.broadcast %38 : i32 to vector<32x128xi32>
      %40 = arith.cmpi slt, %37, %39 : vector<32x128xi32>
      %cst_15 = arith.constant 0.000000e+00 : f32
      %41 = vector.broadcast %cst_15 : f32 to vector<32x128xf32>
      %42 = arith.select %40, %18, %41 : vector<32x128xi1>, vector<32x128xf32>
      %c0_16 = arith.constant 0 : index
      %c0_17 = arith.constant 0 : index
      %43 = vector.load %arg5[%c0_16, %c0_17] : memref<8x128xf32, #tpu.memory_space<vmem>>, vector<8x128xf32>
      %44 = vector.shape_cast %42 : vector<32x128xf32> to vector<4x8x128xf32>
      %cst_18 = arith.constant dense<0.000000e+00> : vector<8x128xf32>
      %45 = vector.multi_reduction <add>, %44, %cst_18 [0] : vector<4x8x128xf32> to vector<8x128xf32>
      %46 = arith.addf %43, %45 : vector<8x128xf32>
      %c0_19 = arith.constant 0 : index
      %c0_20 = arith.constant 0 : index
      %47 = vector.load %arg5[%c0_19, %c0_20] : memref<8x128xf32, #tpu.memory_space<vmem>>, vector<8x128xf32>
      tpu.vector_store %arg5[%c0_19, %c0_20], %46 {strides = array<i32>} : memref<8x128xf32, #tpu.memory_space<vmem>>, vector<8x128xf32>,
    } else {
    }
    %c0_i32_12 = arith.constant 0 : i32
    %30 = arith.cmpi eq, %arg1, %c0_i32_12 : i32
    %31 = arith.extui %30 : i1 to i32
    %c0_i32_13 = arith.constant 0 : i32
    %32 = arith.cmpi ne, %31, %c0_i32_13 : i32
    scf.if %32 {
      %c0_14 = arith.constant 0 : index
      %c0_15 = arith.constant 0 : index
      %33 = vector.load %arg5[%c0_14, %c0_15] : memref<8x128xf32, #tpu.memory_space<vmem>>, vector<8x128xf32>
      %c0_16 = arith.constant 0 : index
      %c0_17 = arith.constant 0 : index
      %c0_18 = arith.constant 0 : index
      %34 = vector.load %arg4[%c0_16, %c0_17, %c0_18] : memref<1x8x128xf32, #tpu.memory_space<vmem>>, vector<1x8x128xf32>
      %35 = vector.shape_cast %34 : vector<1x8x128xf32> to vector<8x128xf32>
      %36 = vector.shape_cast %33 : vector<8x128xf32> to vector<1x8x128xf32>
      tpu.vector_store %arg4[%c0_16, %c0_17, %c0_18], %36 {strides = array<i32>} : memref<1x8x128xf32, #tpu.memory_space<vmem>>, vector<1x8x128xf32>,
    } else {
    }
    return
  }
  func.func @transform_0(%arg0: i32, %arg1: i32) -> (i32, i32) {
    %c1_i32 = arith.constant 1 : i32
    %0 = arith.muli %arg0, %c1_i32 : i32
    %1 = arith.addi %0, %arg1 : i32
    %c0_i32 = arith.constant 0 : i32
    %2 = arith.minsi %1, %c0_i32 : i32
    %c0_i32_0 = arith.constant 0 : i32
    %c0_i32_1 = arith.constant 0 : i32
    return %2, %c0_i32_0 : i32, i32
  }
  func.func @transform_1(%arg0: i32, %arg1: i32) -> (i32, i32) {
    %c1_i32 = arith.constant 1 : i32
    %0 = arith.muli %arg0, %c1_i32 : i32
    %1 = arith.addi %0, %arg1 : i32
    %c0_i32 = arith.constant 0 : i32
    %2 = arith.minsi %1, %c0_i32 : i32
    %c0_i32_0 = arith.constant 0 : i32
    %c0_i32_1 = arith.constant 0 : i32
    return %2, %c0_i32_0 : i32, i32
  }
  func.func @transform_2(%arg0: i32, %arg1: i32) -> (i32, i32, i32) {
    %c0_i32 = arith.constant 0 : i32
    %c0_i32_0 = arith.constant 0 : i32
    %c0_i32_1 = arith.constant 0 : i32
    return %arg0, %c0_i32, %c0_i32_0 : i32, i32, i32
  }
}

</mosaic_0001>

<bundles_post_ra>
// kernel: tpu_custom_call.1
= control target key start
LH: loop header
LB: loop body
LE: loop exit
PB: predicated region body
PF: predicated region fallthrough
CT: control target
= control target key end

     0   :  { %7 = vsyncpa [#allocation4], 0  ;;  %s421_s0 = inlined_call_operand.hbm [shape: f32[16,128], index: 0, kind: input, shape index: {}]   ;;  %s422_s1 = inlined_call_operand.hbm [shape: f32[16,128], index: 1, kind: input, shape index: {}]   ;;  %s423_s2 = inlined_call_operand.hbm [shape: f32[1,8,128], index: 2, kind: output, shape index: {}]  }
   0x1   :  { %8 = vsyncpa [#allocation7], 0 }
   0x2   :  { %9 = vsyncpa [#allocation5], 0 }
   0x3   :  { %20 = vsyncadd [#allocation4], 256  ;;  %s327_s9 = smov [#allocation3]   ;;  %s255_s13 = scalar_lea.hbm %s421_s0, 256 }
   0x4   :  { %s25_s10 = sshll.u32 %s327_s9, 4  ;;  %p256_p0 = scmp.ne.s32.totalorder %s421_s0, %s255_s13  ;;  %s26_s10 = int_to_ptr.vmem [resolvable:$true] %s25_s10 }
   0x5   :  { %p259_p1 = scmp.lt.u32.totalorder %s255_s13, %s421_s0 }
   0x7   :  { %p261_p2 = pnand %p259_p1, %p256_p0 }
   0x9   :  { %264 = shalt.err (!%p261_p2)
}
   0xa   :  { %s265_s18 = scalar_lea.vmem %s26_s10, 256  ;;  %s269_s19 = scalar_lea.vmem %s26_s10, 512 }
   0xb   :  { %p266_p3 = scmp.ne.s32.totalorder %s26_s10, %s265_s18  ;;  %p270_p4 = scmp.lt.s32.totalorder %s26_s10, %s26_s10 }
   0xc   :  { %p271_p5 = scmp.lt.s32.totalorder %s269_s19, %s265_s18 }
   0xe   :  { %p272_p6 = por %p271_p5, %p270_p4 }
  0x10   :  { %p273_p7 = pnand %p272_p6, %p266_p3 }
  0x12   :  { %276 = shalt.err (!%p273_p7)
}
  0x13   :  { %s328_s20 = smov 128   ;;  %s329_s21 = smov 8  }
  0x14   :  { %31 = dma.hbm_to_vmem [thread:$0]  %s421_s0, 256, %s26_s10, [#allocation4], %s328_s20, %s328_s20, %s329_s21  }
  0x15   :  { %42 = vsyncadd [#allocation7], 256  ;;  %s330_s24 = smov [#allocation6]   ;;  %s277_s28 = scalar_lea.hbm %s422_s1, 256 }
  0x16   :  { %s47_s25 = sshll.u32 %s330_s24, 4  ;;  %p278_p8 = scmp.ne.s32.totalorder %s422_s1, %s277_s28  ;;  %s48_s25 = int_to_ptr.vmem [resolvable:$true] %s47_s25 }
  0x17   :  { %p281_p9 = scmp.lt.u32.totalorder %s277_s28, %s422_s1 }
  0x19   :  { %p283_p10 = pnand %p281_p9, %p278_p8 }
  0x1b   :  { %286 = shalt.err (!%p283_p10)
}
  0x1c   :  { %s287_s5 = scalar_lea.vmem %s48_s25, 256  ;;  %s291_s0 = scalar_lea.vmem %s48_s25, 512 }
  0x1d   :  { %p288_p11 = scmp.ne.s32.totalorder %s48_s25, %s287_s5  ;;  %p292_p12 = scmp.lt.s32.totalorder %s48_s25, %s48_s25 }
  0x1e   :  { %p293_p13 = scmp.lt.s32.totalorder %s291_s0, %s287_s5 }
  0x20   :  { %p294_p0 = por %p293_p13, %p292_p12 }
  0x22   :  { %p295_p1 = pnand %p294_p0, %p288_p11 }
  0x24   :  { %298 = shalt.err (!%p295_p1)
}
  0x25   :  { %53 = dma.hbm_to_vmem [thread:$0]  %s422_s1, 256, %s48_s25, [#allocation7], %s328_s20, %s328_s20, %s329_s21  }
  0x26   :  { %321 = dma.done.wait [#allocation4], 512  }
  0x27   :  { %322 = vsyncadd [#allocation4], 4294966784 }
  0x28   :  { %323 = dma.done.wait [#allocation7], 512  }
  0x29   :  { %324 = vsyncadd [#allocation7], 4294966784  ;;  %v371_v0 = vld [vmem:[#allocation3] sm:$0xff]  ;;  %v373_v1 = vld [vmem:[#allocation3 + $0x8] sm:$0xff]  ;;  %v178_v16 = vlaneseq  ;;  %s331_s1 = smov [#allocation8]  }
  0x2a   :  { %v375_v2 = vld [vmem:[#allocation3 + $0x10] sm:$0xff]  ;;  %v377_v3 = vld [vmem:[#allocation3 + $0x18] sm:$0xff]  ;;  %v105_v4 = vand.u32 2147483647, %v371_v0  ;;  %v106_v5 = vand.u32 2147483647, %v373_v1 }
  0x2b   :  { %v107_v6 = vand.u32 2147483647, %v375_v2  ;;  %v108_v7 = vand.u32 2147483647, %v377_v3  ;;  %v179_v17 = vshrl.u32 %v178_v16, 7  ;;  %v81_v18 = vld [vmem:[#allocation6] sm:$0xff] }
  0x2c   :  { %v109_v8 = vsub.f32 0.0, %v105_v4  ;;  %v110_v9 = vsub.f32 0.0, %v106_v5  ;;  %v82_v19 = vld [vmem:[#allocation6 + $0x8] sm:$0xff]  ;;  %v83_v21 = vld [vmem:[#allocation6 + $0x10] sm:$0xff]  ;;  %v84_v24 = vld [vmem:[#allocation6 + $0x18] sm:$0xff]  ;;  %v184_v27 = vand.u32 127, %v178_v16 }
  0x2d   :  { %v111_v10 = vsub.f32 0.0, %v107_v6  ;;  %v112_v11 = vsub.f32 0.0, %v108_v7  ;;  %v180_v22 = vadd.s32 8, %v179_v17  ;;  %v85_v25 = vmul.f32 0.95, %v81_v18  ;;  %s220_s8 = sshll.u32 %s331_s1, 4  ;;  %s221_s8 = int_to_ptr.vmem [resolvable:$true] %s220_s8 }
  0x2e   :  { %v113_v12 = vmul.f32 1.442695, %v109_v8  ;;  %v115_v13 = vmul.f32 1.442695, %v110_v9  ;;  %v86_v29 = vmul.f32 0.95, %v82_v19  ;;  %p304_p3 = scmp.lt.s32.totalorder %s221_s8, %s221_s8 }
  0x2f   :  { %v117_v14 = vmul.f32 1.442695, %v111_v10  ;;  %v119_v15 = vmul.f32 1.442695, %v112_v11  ;;  %v181_v31 = vadd.s32 16, %v179_v17  ;;  %v185_v32 = vmul.u32 128, %v179_v17 }
  0x30   :  { %239 = vpow2.f32 %v113_v12  ;;  %v87_v34 = vmul.f32 0.95, %v83_v21  ;;  %v182_v36 = vadd.s32 24, %v179_v17  ;;  %v88_v37 = vmul.f32 0.95, %v84_v24  ;;  %s299_s9 = scalar_lea.vmem %s221_s8, 128 }
  0x31   :  { %241 = vpow2.f32 %v115_v13  ;;  %v186_v39 = vmul.u32 128, %v180_v22  ;;  %v89_v40 = vadd.f32 0.025, %v85_v25  ;;  %v90_v43 = vadd.f32 0.025, %v86_v29  ;;  %p300_p2 = scmp.ne.s32.totalorder %s221_s8, %s299_s9  ;;  %p305_p4 = scmp.lt.s32.totalorder %s299_s9, %s299_s9 }
  0x32   :  { %243 = vpow2.f32 %v117_v14  ;;  %v187_v45 = vmul.u32 128, %v181_v31  ;;  %v189_v46 = vadd.s32 %v185_v32, %v184_v27  ;;  %v91_v47 = vadd.f32 0.025, %v87_v34 }
  0x33   :  { %245 = vpow2.f32 %v119_v15  ;;  %v93_v48 = vmax.f32 %v371_v0, 0.0  ;;  %v188_v49 = vmul.u32 128, %v182_v36  ;;  %v92_v50 = vadd.f32 0.025, %v88_v37  ;;  %p306_p5 = por %p305_p4, %p304_p3 }
  0x34   :  { %v94_v51 = vmax.f32 %v373_v1, 0.0  ;;  %v95_v54 = vmax.f32 %v375_v2, 0.0  ;;  %v97_v55 = vmul.f32 %v89_v40, %v371_v0  ;;  %v98_v58 = vmul.f32 %v90_v43, %v373_v1 }
  0x35   :  { %v190_v61 = vadd.s32 %v186_v39, %v184_v27  ;;  %v99_v62 = vmul.f32 %v91_v47, %v375_v2  ;;  %v191_v4 = vadd.s32 %v187_v45, %v184_v27  ;;  %v192_v5 = vadd.s32 %v188_v49, %v184_v27  ;;  %p307_p6 = pnand %p306_p5, %p300_p2 }
  0x36   :  { %v96_v6 = vmax.f32 %v377_v3, 0.0  ;;  %v100_v7 = vmul.f32 %v92_v50, %v377_v3  ;;  %v101_v0 = vsub.f32 %v93_v48, %v97_v55  ;;  %v102_v2 = vsub.f32 %v94_v51, %v98_v58 }
  0x37   :  { %v103_v17 = vsub.f32 %v95_v54, %v99_v62  ;;  %vm195_vm3 = vcmp.lt.s32.totalorder %v189_v46, 2048  ;;  %vm196_vm5 = vcmp.lt.s32.totalorder %v190_v61, 2048  ;;  %vm197_vm6 = vcmp.lt.s32.totalorder %v191_v4, 2048 }
  0x38   :  { %v104_v19 = vsub.f32 %v96_v6, %v100_v7  ;;  %vm198_vm7 = vcmp.lt.s32.totalorder %v192_v5, 2048 }
  0x3a   :  { %v240_v20 = vpop.eup %239 }
  0x3b   :  { %v242_v23 = vpop.eup %241  ;;  %v121_v26 = vadd.f32 1.0, %v240_v20  ;;  %v124_v38 = vmul.f32 -0.5, %v240_v20  ;;  %v127_v56 = vand.u32 2147483647, %v240_v20 }
  0x3c   :  { %v244_v28 = vpop.eup %243  ;;  %v130_v30 = vadd.f32 1.0, %v242_v23  ;;  %v133_v41 = vmul.f32 -0.5, %v242_v23  ;;  %v136_v59 = vand.u32 2147483647, %v242_v23 }
  0x3d   :  { %v383_v33 = vpop.eup %245  ;;  %247 = vlog2.f32 %v121_v26  ;;  %v139_v35 = vadd.f32 1.0, %v244_v28  ;;  %v142_v44 = vmul.f32 -0.5, %v244_v28  ;;  %v125_v52 = vadd.f32 1.0, %v124_v38 }
  0x3e   :  { %249 = vlog2.f32 %v130_v30  ;;  %v148_v42 = vadd.f32 1.0, %v383_v33  ;;  %v151_v53 = vmul.f32 -0.5, %v383_v33  ;;  %v134_v57 = vadd.f32 1.0, %v133_v41 }
  0x3f   :  { %251 = vlog2.f32 %v139_v35  ;;  %v143_v60 = vadd.f32 1.0, %v142_v44  ;;  %v145_v63 = vand.u32 2147483647, %v244_v28  ;;  %v126_v8 = vmul.f32 %v240_v20, %v125_v52 }
  0x40   :  { %253 = vlog2.f32 %v148_v42  ;;  %v152_v9 = vadd.f32 1.0, %v151_v53  ;;  %vm395_vm0 = vcmp.lt.f32.partialorder %v127_v56, 0.0004427343  ;;  %v135_v1 = vmul.f32 %v242_v23, %v134_v57 }
  0x41   :  { %v154_v12 = vand.u32 2147483647, %v383_v33  ;;  %vm400_vm1 = vcmp.lt.f32.partialorder %v136_v59, 0.0004427343  ;;  %v144_v16 = vmul.f32 %v244_v28, %v143_v60  ;;  %vm146_vm2 = vcmp.lt.f32.partialorder %v145_v63, 0.0004427343 }
  0x42   :  { %v153_v22 = vmul.f32 %v383_v33, %v152_v9 }
  0x43   :  { %vm155_vm4 = vcmp.lt.f32.partialorder %v154_v12, 0.0004427343 }
  0x47   :  { %v248_v10 = vpop.eup %247 }
  0x48   :  { %v250_v13 = vpop.eup %249  ;;  %v123_v14 = vmul.f32 0.6931472, %v248_v10 }
  0x49   :  { %v252_v3 = vpop.eup %251  ;;  %v132_v18 = vmul.f32 0.6931472, %v250_v13 }
  0x4a   :  { %v129_v20 = vsel %vm395_vm0, %v126_v8, %v123_v14  ;;  %v141_v21 = vmul.f32 0.6931472, %v252_v3  ;;  %v254_v23 = vpop.eup %253 }
  0x4b   :  { %v138_v24 = vsel %vm400_vm1, %v135_v1, %v132_v18  ;;  %v157_v25 = vadd.f32 %v129_v20, %v101_v0  ;;  %v150_v27 = vmul.f32 0.6931472, %v254_v23 }
  0x4c   :  { %v147_v26 = vsel %vm146_vm2, %v144_v16, %v141_v21  ;;  %v158_v28 = vadd.f32 %v138_v24, %v102_v2 }
  0x4d   :  { %v159_v29 = vadd.f32 %v147_v26, %v103_v17  ;;  %v199_v30 = vsel %vm195_vm3, %v157_v25, 0.0  ;;  %v156_v31 = vsel %vm155_vm4, %v153_v22, %v150_v27 }
  0x4e   :  { %v200_v32 = vsel %vm196_vm5, %v158_v28, 0.0  ;;  %v160_v34 = vadd.f32 %v156_v31, %v104_v19 }
  0x4f   :  { %v201_v35 = vsel %vm197_vm6, %v159_v29, 0.0  ;;  %v204_v36 = vadd.f32 %v200_v32, %v199_v30 }
  0x50   :  { %v202_v33 = vsel %vm198_vm7, %v160_v34, 0.0 }
  0x51   :  { %v205_v37 = vadd.f32 %v204_v36, %v201_v35 }
  0x53   :  { %v206_v38 = vadd.f32 %v205_v37, %v202_v33 }
  0x55   :  { %213 = vst [vmem:[#allocation8] sm:$0xff] %v206_v38 }
  0x56   :  { %310 = shalt.err (!%p307_p6)
}
  0x57   :  { %s311_s12 = scalar_lea.hbm %s423_s2, 128 }
  0x58   :  { %p312_p7 = scmp.ne.s32.totalorder %s423_s2, %s311_s12  ;;  %p315_p8 = scmp.lt.u32.totalorder %s311_s12, %s423_s2 }
  0x5a   :  { %p317_p9 = pnand %p315_p8, %p312_p7 }
  0x5c   :  { %320 = shalt.err (!%p317_p9)
}
  0x5d   :  { %223 = dma.vmem_to_hbm [thread:$0]  %s221_s8, 128, %s423_s2, [#allocation5]  }
  0x5e   :  { %325 = dma.done.wait [#allocation5], 128  }
  0x5f   :  { %326 = vsyncadd [#allocation5], 4294967168 }
  0x60   :  { %227 = vsyncpa [#allocation4], 1 }
  0x61   :  { %228 = vsyncpa [#allocation7], 1 }
  0x62   :  { %229 = vsyncpa [#allocation5], 1 }

</bundles_post_ra>
